<compile_context>
chip_gen: v6e
topology: v6e:2x2x1
jax: 0.10.0
libtpu: 0.0.40
codegen_flags: <defaults>
</compile_context>

<pallas_src>
import functools
import math

import jax
import jax.numpy as jnp
from jax.experimental import pallas as pl
from jax.experimental.pallas import tpu as pltpu


# ----------------------------------------------------------------- kernels ---
def _project_kernel(x_ref, w_ref, z_ref):
    """Skinny feature projection: Z = X @ W (f32 accumulate, bf16 store)."""
    z_ref[...] = jnp.dot(
        x_ref[...], w_ref[...], preferred_element_type=jnp.float32
    ).astype(z_ref.dtype)


def _aggregate_kernel(a_ref, z_ref, b_ref, o_ref, acc_ref, *, tk, relu):
    """One GCN aggregation: out_tile = act( sum_k A[i,k] @ Z[k] + b )."""
    k = pl.program_id(1)

    @pl.when(k == 0)
    def _init():
        acc_ref[...] = jnp.zeros_like(acc_ref)

    # Z is resident in VMEM (constant index_map); slice the K-rows we need.
    row0 = pl.multiple_of(k * tk, tk)
    z_blk = z_ref[pl.ds(row0, tk), :]                       # [tk, c_pad] bf16
    acc_ref[...] += jnp.dot(a_ref[...], z_blk,
                            preferred_element_type=jnp.float32)

    @pl.when(k == pl.num_programs(1) - 1)
    def _finalize():
        y = acc_ref[...] + b_ref[...]       # bias added once per output tile
        if relu:
            y = jnp.maximum(y, 0.0)
        o_ref[...] = y.astype(o_ref.dtype)


# ---------------------------------------------------------------- wrappers ---
def _round_up(x, m):
    return (x + m - 1) // m * m


def _project(x, w, *, tm):
    """Z = X @ W over row tiles (all-Pallas skinny matmul)."""
    n_pad, cin = x.shape
    c_pad = w.shape[1]
    return pl.pallas_call(
        _project_kernel,
        out_shape=jax.ShapeDtypeStruct((n_pad, c_pad), jnp.bfloat16),
        grid_spec=pltpu.PrefetchScalarGridSpec(
            num_scalar_prefetch=0,
            grid=(n_pad // tm,),
            in_specs=[pl.BlockSpec((tm, cin), lambda i: (i, 0)),
                      pl.BlockSpec((cin, c_pad), lambda i: (0, 0))],
            out_specs=pl.BlockSpec((tm, c_pad), lambda i: (i, 0))),
        compiler_params=pltpu.CompilerParams(
            dimension_semantics=("parallel",)),
    )(x, w)


def _aggregate(a, z, b, *, tm, tk, relu, out_dtype):
    """out = act(A @ Z + b), streaming A through (tm, tk) tiles."""
    n_pad = a.shape[0]
    c_pad = z.shape[1]
    kernel = functools.partial(_aggregate_kernel, tk=tk, relu=relu)

    flops = 2 * n_pad * n_pad * c_pad
    bytes_accessed = (a.size * a.dtype.itemsize
                      + z.size * z.dtype.itemsize
                      + b.size * b.dtype.itemsize
                      + n_pad * c_pad * jnp.dtype(out_dtype).itemsize)

    return pl.pallas_call(
        kernel,
        out_shape=jax.ShapeDtypeStruct((n_pad, c_pad), out_dtype),
        grid_spec=pltpu.PrefetchScalarGridSpec(
            num_scalar_prefetch=0,
            grid=(n_pad // tm, n_pad // tk),                 # reduction axis last
            in_specs=[
                pl.BlockSpec((tm, tk), lambda i, k: (i, k)),        # stream A tiles
                pl.BlockSpec((n_pad, c_pad), lambda i, k: (0, 0)),  # Z resident
                pl.BlockSpec((1, c_pad), lambda i, k: (0, 0)),      # bias resident
            ],
            out_specs=pl.BlockSpec((tm, c_pad), lambda i, k: (i, 0)),
            scratch_shapes=[pltpu.VMEM((tm, c_pad), jnp.float32)]),
        compiler_params=pltpu.CompilerParams(
            dimension_semantics=("parallel", "arbitrary")),
        cost_estimate=pl.CostEstimate(flops=flops, transcendentals=0,
                                      bytes_accessed=bytes_accessed),
    )(a, z, b)


def vgae_encoder(a_hat, x, params, *, tm=256, tk=256):
    """a_hat: [N,N] normalized adjacency; x: [N,Cin]; params: dict of weights.

    Returns (mu, logstd), each [N, out_channels] f32.
    Tile sizes fit v5e/v6e/v7x VMEM comfortably; bump tm/tk to 512 on v6e for
    a few extra % of HBM roofline if desired.
    """
    n, cin = x.shape
    c_out = params["wmu"].shape[1]
    hid = params["w1"].shape[1]                     # 2 * c_out

    lane = 128
    n_pad = _round_up(n, math.lcm(tm, tk))
    hid_pad = _round_up(hid, lane)
    out_pad = _round_up(2 * c_out, lane)

    f32, bf16 = jnp.float32, jnp.bfloat16

    # --- pad + cast (glue; zero padding keeps the math exact for rows < n) ---
    a_p = jnp.zeros((n_pad, n_pad), bf16).at[:n, :n].set(a_hat.astype(bf16))
    x_p = jnp.zeros((n_pad, cin), bf16).at[:n, :].set(x.astype(bf16))

    w1_p = jnp.zeros((cin, hid_pad), bf16).at[:, :hid].set(params["w1"].astype(bf16))
    b1_p = jnp.zeros((1, hid_pad), f32).at[:, :hid].set(params["b1"])

    # Fuse conv_mu / conv_logstd: one projection + ONE A aggregation for both.
    w2 = jnp.concatenate([params["wmu"], params["wls"]], axis=1)   # [hid, 2*c_out]
    b2 = jnp.concatenate([params["bmu"], params["bls"]], axis=1)   # [1,  2*c_out]
    w2_p = jnp.zeros((hid_pad, out_pad), bf16).at[:hid, :2 * c_out].set(w2.astype(bf16))
    b2_p = jnp.zeros((1, out_pad), f32).at[:, :2 * c_out].set(b2)

    # --- layer 1: h = relu(A @ (X @ W1) + b1) ---
    z1 = _project(x_p, w1_p, tm=tm)                                   # [n_pad, hid_pad]
    h = _aggregate(a_p, z1, b1_p, tm=tm, tk=tk, relu=True, out_dtype=bf16)

    # --- layer 2 (fused mu|logstd): A @ (h @ [Wmu|Wls]) + [bmu|bls] ---
    z2 = _project(h, w2_p, tm=tm)                                     # [n_pad, out_pad]
    out = _aggregate(a_p, z2, b2_p, tm=tm, tk=tk, relu=False, out_dtype=f32)

    mu = out[:n, :c_out]
    logstd = out[:n, c_out:2 * c_out]
    return mu, logstd


# ------------------------------------------------------------------- glue ----
def normalized_adjacency(edge_index, num_nodes):
    """Dense D^{-1/2}(A+I)D^{-1/2} exactly as PyG GCNConv.gcn_norm builds it."""
    src, dst = edge_index[0], edge_index[1]
    loop = jnp.arange(num_nodes, dtype=src.dtype)
    src = jnp.concatenate([src, loop])
    dst = jnp.concatenate([dst, loop])
    deg = jnp.zeros((num_nodes,), jnp.float32).at[dst].add(1.0)
    dinv = jnp.where(deg > 0.0, 1.0 / jnp.sqrt(deg), 0.0)
    norm = dinv[src] * dinv[dst]
    # message flows src -> dst; row = target, col = source
    a = jnp.zeros((num_nodes, num_nodes), jnp.float32).at[dst, src].add(norm)
    return a


def init_params(key, in_channels, out_channels):
    """Deterministic (Glorot-style) init; shapes follow GCNConv(in, out)."""
    hidden = 2 * out_channels
    k1, k2, k3 = jax.random.split(key, 3)

    def glorot(k, fan_in, fan_out):
        scale = jnp.sqrt(6.0 / (fan_in + fan_out))
        return jax.random.uniform(k, (fan_in, fan_out), jnp.float32, -scale, scale)

    return {
        "w1":  glorot(k1, in_channels, hidden),
        "b1":  jnp.zeros((1, hidden), jnp.float32),          # GCNConv bias init = zeros
        "wmu": glorot(k2, hidden, out_channels),
        "bmu": jnp.zeros((1, out_channels), jnp.float32),
        "wls": glorot(k3, hidden, out_channels),
        "bls": jnp.zeros((1, out_channels), jnp.float32),
    }


# -------------------------------------------------------------------- main ---
if __name__ == "__main__":
    N = 32            # nodes
    IN_CH = 16        # in_channels
    OUT_CH = 8        # out_channels  (hidden = 2*out_channels = 16)
    NUM_E = 40        # directed edges before symmetrization

    root = jax.random.PRNGKey(0)
    k_x, k_e1, k_e2, k_p = jax.random.split(root, 4)

    # node features
    x = jax.random.normal(k_x, (N, IN_CH), jnp.float32)

    # random undirected edge_index [2, 2*NUM_E]
    src = jax.random.randint(k_e1, (NUM_E,), 0, N, dtype=jnp.int32)
    dst = jax.random.randint(k_e2, (NUM_E,), 0, N, dtype=jnp.int32)
    edge_index = jnp.stack([jnp.concatenate([src, dst]),
                            jnp.concatenate([dst, src])], axis=0)

    params = init_params(k_p, IN_CH, OUT_CH)
    a_hat = normalized_adjacency(edge_index, N)

    mu, logstd = vgae_encoder(a_hat, x, params)
    jax.block_until_ready((mu, logstd))

    # pure-f32 reference of the same math (kernel uses bf16 A/X/W, f32 accumulate)
    h_ref = jnp.maximum(a_hat @ (x @ params["w1"]) + params["b1"], 0.0)
    mu_ref = a_hat @ (h_ref @ params["wmu"]) + params["bmu"]
    ls_ref = a_hat @ (h_ref @ params["wls"]) + params["bls"]

    assert mu.shape == (N, OUT_CH) and logstd.shape == (N, OUT_CH)
    assert jnp.allclose(mu, mu_ref, atol=5e-2, rtol=5e-2), "mu mismatch"
    assert jnp.allclose(logstd, ls_ref, atol=5e-2, rtol=5e-2), "logstd mismatch"

    print("KERNEL_OK")
</pallas_src>

<mosaic_0001>
module attributes {stable_mosaic.version = 11 : i64} {
  func.func @_project_kernel(%arg0: i32, %arg1: memref<256x16xbf16, #tpu.memory_space<vmem>>, %arg2: memref<16x128xbf16, #tpu.memory_space<vmem>>, %arg3: memref<256x128xbf16, #tpu.memory_space<vmem>>) attributes {dimension_semantics = [#tpu.dimension_semantics<parallel>], iteration_bounds = array<i64: 1>, scalar_prefetch = 0 : i64, scratch_operands = 0 : i64, tpu.core_type = #tpu.core_type<tc>, window_params = [{transform_indices = @transform_0, window_bounds = array<i64: 256, 16>}, {pipeline_mode = #tpu.pipeline_mode<synchronous>, transform_indices = @transform_1, window_bounds = array<i64: 16, 128>}, {transform_indices = @transform_2, window_bounds = array<i64: 256, 128>}]} {
    %c0 = arith.constant 0 : index
    %c0_0 = arith.constant 0 : index
    %0 = vector.load %arg1[%c0, %c0_0] : memref<256x16xbf16, #tpu.memory_space<vmem>>, vector<256x16xbf16>
    %c0_1 = arith.constant 0 : index
    %c0_2 = arith.constant 0 : index
    %1 = vector.load %arg2[%c0_1, %c0_2] : memref<16x128xbf16, #tpu.memory_space<vmem>>, vector<16x128xbf16>
    %cst = arith.constant dense<0.000000e+00> : vector<256x128xf32>
    %2 = tpu.matmul %0, %1, %cst {dimension_numbers = #tpu.dot_dimension_numbers<[1], [0], [0], [1], [0, 0, 1, 1], [], []>} : vector<256x16xbf16>, vector<16x128xbf16>, vector<256x128xf32> -> vector<256x128xf32>
    %3 = arith.truncf %2 : vector<256x128xf32> to vector<256x128xbf16>
    %c0_3 = arith.constant 0 : index
    %c0_4 = arith.constant 0 : index
    %4 = vector.load %arg3[%c0_3, %c0_4] : memref<256x128xbf16, #tpu.memory_space<vmem>>, vector<256x128xbf16>
    tpu.vector_store %arg3[%c0_3, %c0_4], %3 {strides = array<i32>} : memref<256x128xbf16, #tpu.memory_space<vmem>>, vector<256x128xbf16>,
    return
  }
  func.func @transform_0(%arg0: i32) -> (i32, i32) {
    %c0_i32 = arith.constant 0 : i32
    %c0_i32_0 = arith.constant 0 : i32
    return %arg0, %c0_i32 : i32, i32
  }
  func.func @transform_1(%arg0: i32) -> (i32, i32) {
    %c0_i32 = arith.constant 0 : i32
    %c0_i32_0 = arith.constant 0 : i32
    %c0_i32_1 = arith.constant 0 : i32
    return %c0_i32, %c0_i32_0 : i32, i32
  }
  func.func @transform_2(%arg0: i32) -> (i32, i32) {
    %c0_i32 = arith.constant 0 : i32
    %c0_i32_0 = arith.constant 0 : i32
    return %arg0, %c0_i32 : i32, i32
  }
}

</mosaic_0001>

<bundles_post_ra>
// kernel: tpu_custom_call.1
= control target key start
LH: loop header
LB: loop body
LE: loop exit
PB: predicated region body
PF: predicated region fallthrough
CT: control target
= control target key end

     0   :  { %vm133_vm0 = vcmask 130048   ;;  %s894_s0 = inlined_call_operand.vmem [shape: bf16[256,16], index: 0, kind: input, shape index: {}]   ;;  %s895_s1 = inlined_call_operand.vmem [shape: bf16[16,128], index: 1, kind: input, shape index: {}]   ;;  %s896_s2 = inlined_call_operand.hbm [shape: bf16[256,128], index: 2, kind: output, shape index: {}]  }
   0x1   :  { %v767_v0 = vld [vmem:[%s895_s1] sm:$0xff]   ;;  %v770_v3 = vld [vmem:[%s894_s0 + $0x8] sm:$0xff]   ;;  %v772_v5 = vld [vmem:[%s894_s0 + $0x10] sm:$0xff]  }
   0x2   :  { %v768_v1 = vld [vmem:[%s894_s0] sm:$0xff]   ;;  %728 = vmatprep.subr.bf16.mxu0 %v767_v0  ;;  %762 = vmatprep.subr.bf16.mxu1 %v767_v0  ;;  %v771_v4 = vld [vmem:[%s894_s0 + $0x48] sm:$0xff]   ;;  %v773_v6 = vld [vmem:[%s894_s0 + $0x50] sm:$0xff]  }
   0x3   :  { %v769_v2 = vld [vmem:[%s894_s0 + $0x40] sm:$0xff]   ;;  %729 = vmatpush3.bf16.msra.mxu0 %v767_v0  ;;  %763 = vmatpush3.bf16.msra.mxu1 %v767_v0  ;;  %v774_v7 = vld [vmem:[%s894_s0 + $0x18] sm:$0xff]  }
   0x4   :  { %730 = vmatprep.mubr.msk.bf16.mxu0 %vm133_vm0, %v768_v1  ;;  %746 = vmatprep.mubr.msk.bf16.mxu1 %vm133_vm0, %v769_v2  ;;  %v775_v8 = vld [vmem:[%s894_s0 + $0x58] sm:$0xff]   ;;  %v776_v9 = vld [vmem:[%s894_s0 + $0x20] sm:$0xff]  }
   0x5   :  { %v777_v10 = vld [vmem:[%s894_s0 + $0x60] sm:$0xff]  }
   0x6   :  { %731 = vmatmul.mubr.msk.bf16.vlgmr.msra.gmra.mxu0 %vm133_vm0, %v770_v3  ;;  %747 = vmatmul.mubr.msk.bf16.vlgmr.msra.gmra.mxu1 %vm133_vm0, %v771_v4 }
   0x7   :  { %734 = vmatprep.mubr.msk.bf16.mxu0 %vm133_vm0, %v772_v5  ;;  %750 = vmatprep.mubr.msk.bf16.mxu1 %vm133_vm0, %v773_v6 }
   0xe   :  { %735 = vmatmul.mubr.msk.bf16.gmra.mxu0 %vm133_vm0, %v774_v7  ;;  %751 = vmatmul.mubr.msk.bf16.gmra.mxu1 %vm133_vm0, %v775_v8 }
   0xf   :  { %738 = vmatprep.mubr.msk.bf16.mxu0 %vm133_vm0, %v776_v9  ;;  %754 = vmatprep.mubr.msk.bf16.mxu1 %vm133_vm0, %v777_v10 }
  0x10   :  { %7 = vsyncpa [#allocation3], 0  ;;  %v778_v11 = vld [vmem:[%s894_s0 + $0x28] sm:$0xff]   ;;  %v780_v13 = vld [vmem:[%s894_s0 + $0x30] sm:$0xff]  }
  0x11   :  { %v779_v12 = vld [vmem:[%s894_s0 + $0x68] sm:$0xff]   ;;  %v781_v14 = vld [vmem:[%s894_s0 + $0x70] sm:$0xff]   ;;  %v782_v15 = vld [vmem:[%s894_s0 + $0x38] sm:$0xff]  }
  0x12   :  { %v783_v16 = vld [vmem:[%s894_s0 + $0x78] sm:$0xff]   ;;  %s806_s0 = smov [#allocation2]  }
  0x13   :  { %s508_s14 = sshll.u32 %s806_s0, 4  ;;  %s509_s14 = int_to_ptr.vmem [resolvable:$true] %s508_s14 }
  0x14   :  { %s784_s15 = scalar_lea.vmem %s509_s14, 2048  ;;  %p789_p1 = scmp.lt.s32.totalorder %s509_s14, %s509_s14 }
  0x15   :  { %p785_p0 = scmp.ne.s32.totalorder %s509_s14, %s784_s15  ;;  %p790_p2 = scmp.lt.s32.totalorder %s784_s15, %s784_s15 }
  0x16   :  { %739 = vmatmul.mubr.msk.bf16.gmra.mxu0 %vm133_vm0, %v778_v11  ;;  %755 = vmatmul.mubr.msk.bf16.gmra.mxu1 %vm133_vm0, %v779_v12 }
  0x17   :  { %742 = vmatprep.mubr.msk.bf16.mxu0 %vm133_vm0, %v780_v13  ;;  %758 = vmatprep.mubr.msk.bf16.mxu1 %vm133_vm0, %v781_v14  ;;  %p791_p3 = por %p790_p2, %p789_p1 }
  0x19   :  { %p792_p4 = pnand %p791_p3, %p785_p0 }
  0x1e   :  { %743 = vmatmul.mubr.msk.bf16.gmra.mxu0 %vm133_vm0, %v782_v15  ;;  %759 = vmatmul.mubr.msk.bf16.gmra.mxu1 %vm133_vm0, %v783_v16 }
  0xc6   :  { %v732_v17 = vpop.f32.mrf.mxu0  ;;  %v748_v18 = vpop.f32.mrf.mxu1 }
  0xc8   :  { %v216_v19 = vpop.f32.mrf.mxu0  ;;  %v280_v20 = vpop.f32.mrf.mxu1 }
  0xca   :  { %v733_v21 = vpop.f32.mrf.mxu0  ;;  %v749_v22 = vpop.f32.mrf.mxu1 }
  0xcb   :  { %v624_v23 = vpack.c.bf16 %v733_v21, %v732_v17  ;;  %v664_v24 = vpack.c.bf16 %v749_v22, %v748_v18 }
  0xcc   :  { %v219_v25 = vpop.f32.mrf.mxu0  ;;  %v283_v26 = vpop.f32.mrf.mxu1 }
  0xcd   :  { %696 = vst [vmem:[#allocation2 + $0x8] sm:$0xff] %v624_v23   ;;  %704 = vst [vmem:[#allocation2 + $0x48] sm:$0xff] %v664_v24   ;;  %v619_v27 = vpack.c.bf16 %v219_v25, %v216_v19  ;;  %v659_v28 = vpack.c.bf16 %v283_v26, %v280_v20 }
  0xce   :  { %v736_v29 = vpop.f32.mrf.mxu0  ;;  %v752_v30 = vpop.f32.mrf.mxu1 }
  0xcf   :  { %620 = vst [vmem:[#allocation2] sm:$0xff] %v619_v27   ;;  %703 = vst [vmem:[#allocation2 + $0x40] sm:$0xff] %v659_v28  }
  0xd0   :  { %v232_v31 = vpop.f32.mrf.mxu0  ;;  %v296_v32 = vpop.f32.mrf.mxu1 }
  0xd2   :  { %v737_v33 = vpop.f32.mrf.mxu0  ;;  %v753_v34 = vpop.f32.mrf.mxu1 }
  0xd3   :  { %v634_v35 = vpack.c.bf16 %v737_v33, %v736_v29  ;;  %v674_v36 = vpack.c.bf16 %v753_v34, %v752_v30 }
  0xd4   :  { %v235_v37 = vpop.f32.mrf.mxu0  ;;  %v299_v38 = vpop.f32.mrf.mxu1 }
  0xd5   :  { %698 = vst [vmem:[#allocation2 + $0x18] sm:$0xff] %v634_v35   ;;  %706 = vst [vmem:[#allocation2 + $0x58] sm:$0xff] %v674_v36   ;;  %v629_v39 = vpack.c.bf16 %v235_v37, %v232_v31  ;;  %v669_v40 = vpack.c.bf16 %v299_v38, %v296_v32 }
  0xd6   :  { %v740_v41 = vpop.f32.mrf.mxu0  ;;  %v756_v42 = vpop.f32.mrf.mxu1 }
  0xd7   :  { %697 = vst [vmem:[#allocation2 + $0x10] sm:$0xff] %v629_v39   ;;  %705 = vst [vmem:[#allocation2 + $0x50] sm:$0xff] %v669_v40  }
  0xd8   :  { %v248_v43 = vpop.f32.mrf.mxu0  ;;  %v312_v44 = vpop.f32.mrf.mxu1 }
  0xda   :  { %v741_v45 = vpop.f32.mrf.mxu0  ;;  %v757_v46 = vpop.f32.mrf.mxu1 }
  0xdb   :  { %v644_v47 = vpack.c.bf16 %v741_v45, %v740_v41  ;;  %v684_v48 = vpack.c.bf16 %v757_v46, %v756_v42 }
  0xdc   :  { %v251_v49 = vpop.f32.mrf.mxu0  ;;  %v315_v50 = vpop.f32.mrf.mxu1 }
  0xdd   :  { %700 = vst [vmem:[#allocation2 + $0x28] sm:$0xff] %v644_v47   ;;  %708 = vst [vmem:[#allocation2 + $0x68] sm:$0xff] %v684_v48   ;;  %v639_v51 = vpack.c.bf16 %v251_v49, %v248_v43  ;;  %v679_v52 = vpack.c.bf16 %v315_v50, %v312_v44 }
  0xde   :  { %v744_v53 = vpop.f32.mrf.mxu0  ;;  %v760_v54 = vpop.f32.mrf.mxu1 }
  0xdf   :  { %699 = vst [vmem:[#allocation2 + $0x20] sm:$0xff] %v639_v51   ;;  %707 = vst [vmem:[#allocation2 + $0x60] sm:$0xff] %v679_v52  }
  0xe0   :  { %v264_v55 = vpop.f32.mrf.mxu0  ;;  %v328_v56 = vpop.f32.mrf.mxu1 }
  0xe2   :  { %v745_v57 = vpop.f32.mrf.mxu0  ;;  %v761_v58 = vpop.f32.mrf.mxu1 }
  0xe3   :  { %v654_v59 = vpack.c.bf16 %v745_v57, %v744_v53  ;;  %v694_v60 = vpack.c.bf16 %v761_v58, %v760_v54 }
  0xe4   :  { %v267_v61 = vpop.f32.mrf.mxu0  ;;  %v331_v62 = vpop.f32.mrf.mxu1 }
  0xe5   :  { %702 = vst [vmem:[#allocation2 + $0x38] sm:$0xff] %v654_v59   ;;  %710 = vst [vmem:[#allocation2 + $0x78] sm:$0xff] %v694_v60   ;;  %v649_v63 = vpack.c.bf16 %v267_v61, %v264_v55  ;;  %v689_v0 = vpack.c.bf16 %v331_v62, %v328_v56 }
  0xe7   :  { %701 = vst [vmem:[#allocation2 + $0x30] sm:$0xff] %v649_v63   ;;  %709 = vst [vmem:[#allocation2 + $0x70] sm:$0xff] %v689_v0  }
  0xe8   :  { %795 = shalt.err (!%p792_p4)
}
  0xe9   :  { %s807_s16 = smov 64   ;;  %s808_s1 = smov 4  }
  0xea   :  { %514 = dma.vmem_to_hbm [thread:$0]  %s509_s14, 2048, %s896_s2, [#allocation3], %s807_s16, %s807_s16, %s808_s1  }
  0xeb   :  { %804 = dma.done.wait [#allocation3], 2048  }
  0xec   :  { %805 = vsyncadd [#allocation3], 4294965248 }
  0xed   :  { %518 = vsyncpa [#allocation3], 1 }

</bundles_post_ra>
